<compile_context>
chip_gen: v6e
topology: v6e:2x2x1
jax: 0.10.0
libtpu: 0.0.40
codegen_flags: <defaults>
</compile_context>

<pallas_src>
import functools

import numpy as np
import jax
import jax.numpy as jnp
from jax.experimental import pallas as pl
from jax.experimental.pallas import tpu as pltpu


def _build_pe(embedding_dim: int, max_length: int = 5000) -> jnp.ndarray:
    """Deterministic sinusoidal table, identical to the PyTorch __init__."""
    position = np.arange(0, max_length, dtype=np.float32)[:, None]            # (L, 1)
    div_term = np.exp(
        np.arange(0, embedding_dim, 2, dtype=np.float32)
        * (-np.log(10000.0) / embedding_dim)
    )                                                                         # (D/2,)
    pe = np.zeros((max_length, embedding_dim), dtype=np.float32)
    pe[:, 0::2] = np.sin(position * div_term)
    pe[:, 1::2] = np.cos(position * div_term)
    return jnp.asarray(pe[:, None, :])                                        # (L, 1, D)


def _add_pe_kernel(x_ref, pe_ref, o_ref, *, batch: int, dim: int, per_batch: bool):
    """x_ref: (ts, B*D); pe_ref: (ts, D); o_ref: (ts, B*D)."""
    pe = pe_ref[...].astype(jnp.float32)                       # (ts, D)
    if per_batch:
        # D % 128 == 0: lane-aligned static slices, one (ts, D) add per batch.
        # Never materializes a (ts, B*D) copy of pe.
        for b in range(batch):
            lo = b * dim
            xb = x_ref[:, lo:lo + dim].astype(jnp.float32)
            o_ref[:, lo:lo + dim] = (xb + pe).astype(o_ref.dtype)
    else:
        # B*D is a 128-multiple but D is not: replicate pe along lanes once.
        if batch > 1:
            pe = jnp.tile(pe, (1, batch))                       # (ts, B*D)
        o_ref[...] = (x_ref[...].astype(jnp.float32) + pe).astype(o_ref.dtype)


def _device_kind() -> str:
    try:
        return jax.devices()[0].device_kind.lower()
    except Exception:
        return ""


def _tile_params(kind: str):
    """(target bytes of x per block, minimum number of grid steps)."""
    if "v5" in kind:
        return 4 << 20, 2     # ~820 GB/s HBM: 2-4 MiB blocks already amortize overhead
    if "v6" in kind:
        return 8 << 20, 2     # single TC, ~1.4 TB/s HBM
    # v7x (or unknown): 3.2 TB/s HBM, 2 TCs sharing the grid via "parallel"
    # semantics -> bigger blocks and >=4 steps so each core gets >=2 iterations.
    return 10 << 20, 4


def _choose_seq_tile(S, row_bytes, target_bytes, min_steps):
    if S <= 8:
        return S
    ts = max(8, target_bytes // row_bytes)
    ts = min(ts, -(-S // min_steps))       # at least min_steps grid steps
    ts = max(8, (ts // 8) * 8)             # multiple of 8 rows (sublane tiling)
    return int(min(ts, S))


def _fixed_positional_encoding_pallas(x, pe2d, out_dtype):
    S, B, D = x.shape
    in_item = np.dtype(x.dtype).itemsize
    out_item = np.dtype(out_dtype).itemsize
    pe_item = np.dtype(pe2d.dtype).itemsize
    x2d = x.reshape(S, B * D)                                   # free, contiguous

    per_batch = (D % 128 == 0)
    target_bytes, min_steps = _tile_params(_device_kind())
    row_bytes = B * D * max(in_item, out_item)
    ts = _choose_seq_tile(S, row_bytes, target_bytes, min_steps)
    grid = (pl.cdiv(S, ts),)

    blk_in = ts * B * D * in_item
    blk_out = ts * B * D * out_item
    blk_pe = ts * D * pe_item
    # Tile path materializes a block-sized f32 pe temporary; account for it.
    extra_tmp = 0 if per_batch else ts * B * D * 4
    vmem_limit = int(min(48 << 20,
                         max(16 << 20,
                             2 * (blk_in + blk_out + blk_pe) + extra_tmp + (4 << 20))))

    cost = pl.CostEstimate(
        flops=S * B * D,
        transcendentals=0,
        bytes_accessed=S * B * D * (in_item + out_item) + S * D * pe_item,
    )

    out2d = pl.pallas_call(
        functools.partial(_add_pe_kernel, batch=B, dim=D, per_batch=per_batch),
        out_shape=jax.ShapeDtypeStruct((S, B * D), out_dtype),
        grid_spec=pltpu.PrefetchScalarGridSpec(
            num_scalar_prefetch=0,
            grid=grid,
            in_specs=[
                pl.BlockSpec((ts, B * D), lambda i: (i, 0)),   # x slab
                pl.BlockSpec((ts, D), lambda i: (i, 0)),       # squeezed pe (f32)
            ],
            out_specs=pl.BlockSpec((ts, B * D), lambda i: (i, 0)),
        ),
        compiler_params=pltpu.CompilerParams(
            dimension_semantics=("parallel",),
            vmem_limit_bytes=vmem_limit,
        ),
        cost_estimate=cost,
    )(x2d, pe2d)

    return out2d.reshape(S, B, D)


def fixed_positional_encoding(x, pe, *, min_pallas_bytes=1 << 20, force_pallas=False):
    """x: (S, B, D); pe: (max_length, 1, D) or (max_length, D). Returns x + pe[:S]."""
    S, B, D = x.shape
    pe2d = pe.reshape(pe.shape[0], -1)[:S]                       # (S, D), native f32
    out_dtype = jnp.result_type(x.dtype, pe2d.dtype)             # PyTorch-style promotion
    lane_dense = (B * D) % 128 == 0
    small = x.size * np.dtype(x.dtype).itemsize < min_pallas_bytes
    if (not lane_dense) or (small and not force_pallas):
        # Non-lane-dense slabs would hit masked partial stores; tiny inputs are
        # dominated by dispatch overhead.  XLA's fused broadcast add handles both.
        return (x.astype(out_dtype) + pe2d[:, None, :].astype(out_dtype))
    return _fixed_positional_encoding_pallas(x, pe2d, out_dtype)


if __name__ == "__main__":
    # Shapes consistent with the module: x is (seq_len, batch, embedding_dim).
    # D = 128 keeps the (S, B*D) slab lane-dense and exercises the per-batch
    # (no-tile) fast path inside the kernel.
    S, B, D = 8, 2, 128
    key = jax.random.PRNGKey(0)
    x = jax.random.normal(key, (S, B, D), dtype=jnp.float32)
    pe = _build_pe(embedding_dim=D, max_length=5000)
    ref = x + pe[:S]
    out = jax.block_until_ready(fixed_positional_encoding(x, pe, force_pallas=True))
    np.testing.assert_allclose(np.asarray(out), np.asarray(ref), rtol=1e-6, atol=1e-6)

    # Real sequence tiling (grid > 1), lane-dense slab of width 512.
    S2, B2, D2 = 384, 4, 128
    x2 = jax.random.normal(jax.random.PRNGKey(1), (S2, B2, D2), dtype=jnp.float32)
    pe2 = _build_pe(embedding_dim=D2, max_length=5000)
    ref2 = x2 + pe2[:S2]
    out2 = jax.block_until_ready(fixed_positional_encoding(x2, pe2, force_pallas=True))
    np.testing.assert_allclose(np.asarray(out2), np.asarray(ref2), rtol=1e-6, atol=1e-6)

    # D not a multiple of 128 but B*D lane-dense: exercises the in-kernel tile
    # fallback path.
    S3, B3, D3 = 16, 2, 64
    x3 = jax.random.normal(jax.random.PRNGKey(2), (S3, B3, D3), dtype=jnp.float32)
    pe3 = _build_pe(embedding_dim=D3, max_length=5000)
    ref3 = x3 + pe3[:S3]
    out3 = jax.block_until_ready(fixed_positional_encoding(x3, pe3, force_pallas=True))
    np.testing.assert_allclose(np.asarray(out3), np.asarray(ref3), rtol=1e-6, atol=1e-6)

    # Non-lane-dense slab (B*D % 128 != 0): takes the XLA fallback by design.
    S4, B4, D4 = 8, 2, 32
    x4 = jax.random.normal(jax.random.PRNGKey(3), (S4, B4, D4), dtype=jnp.float32)
    pe4 = _build_pe(embedding_dim=D4, max_length=5000)
    ref4 = x4 + pe4[:S4]
    out4 = jax.block_until_ready(fixed_positional_encoding(x4, pe4))
    np.testing.assert_allclose(np.asarray(out4), np.asarray(ref4), rtol=1e-6, atol=1e-6)

    print("KERNEL_OK")
</pallas_src>

<mosaic_0001>
module attributes {stable_mosaic.version = 11 : i64} {
  func.func @_add_pe_kernel(%arg0: i32, %arg1: memref<8x256xf32, #tpu.memory_space<vmem>>, %arg2: memref<8x128xf32, #tpu.memory_space<vmem>>, %arg3: memref<8x256xf32, #tpu.memory_space<vmem>>) attributes {dimension_semantics = [#tpu.dimension_semantics<parallel>], iteration_bounds = array<i64: 1>, scalar_prefetch = 0 : i64, scratch_operands = 0 : i64, tpu.core_type = #tpu.core_type<tc>, window_params = [{transform_indices = @transform_0, window_bounds = array<i64: 8, 256>}, {transform_indices = @transform_1, window_bounds = array<i64: 8, 128>}, {transform_indices = @transform_2, window_bounds = array<i64: 8, 256>}]} {
    %c0 = arith.constant 0 : index
    %c0_0 = arith.constant 0 : index
    %0 = vector.load %arg2[%c0, %c0_0] : memref<8x128xf32, #tpu.memory_space<vmem>>, vector<8x128xf32>
    %c0_1 = arith.constant 0 : index
    %c0_2 = arith.constant 0 : index
    %1 = vector.load %arg1[%c0_1, %c0_2] : memref<8x256xf32, #tpu.memory_space<vmem>>, vector<8x128xf32>
    %2 = arith.addf %1, %0 : vector<8x128xf32>
    %c0_3 = arith.constant 0 : index
    %c0_4 = arith.constant 0 : index
    %3 = vector.load %arg3[%c0_3, %c0_4] : memref<8x256xf32, #tpu.memory_space<vmem>>, vector<8x128xf32>
    tpu.vector_store %arg3[%c0_3, %c0_4], %2 {strides = array<i32>} : memref<8x256xf32, #tpu.memory_space<vmem>>, vector<8x128xf32>,
    %c0_5 = arith.constant 0 : index
    %c128 = arith.constant 128 : index
    %4 = vector.load %arg1[%c0_5, %c128] : memref<8x256xf32, #tpu.memory_space<vmem>>, vector<8x128xf32>
    %5 = arith.addf %4, %0 : vector<8x128xf32>
    %c0_6 = arith.constant 0 : index
    %c128_7 = arith.constant 128 : index
    %6 = vector.load %arg3[%c0_6, %c128_7] : memref<8x256xf32, #tpu.memory_space<vmem>>, vector<8x128xf32>
    tpu.vector_store %arg3[%c0_6, %c128_7], %5 {strides = array<i32>} : memref<8x256xf32, #tpu.memory_space<vmem>>, vector<8x128xf32>,
    return
  }
  func.func @transform_0(%arg0: i32) -> (i32, i32) {
    %c0_i32 = arith.constant 0 : i32
    %c0_i32_0 = arith.constant 0 : i32
    return %arg0, %c0_i32 : i32, i32
  }
  func.func @transform_1(%arg0: i32) -> (i32, i32) {
    %c0_i32 = arith.constant 0 : i32
    %c0_i32_0 = arith.constant 0 : i32
    return %arg0, %c0_i32 : i32, i32
  }
  func.func @transform_2(%arg0: i32) -> (i32, i32) {
    %c0_i32 = arith.constant 0 : i32
    %c0_i32_0 = arith.constant 0 : i32
    return %arg0, %c0_i32 : i32, i32
  }
}

</mosaic_0001>

<bundles_post_ra>
// kernel: tpu_custom_call.1
= control target key start
LH: loop header
LB: loop body
LE: loop exit
PB: predicated region body
PF: predicated region fallthrough
CT: control target
= control target key end

     0   :  { %7 = vsyncpa [#allocation3], 0  ;;  %s155_s0 = inlined_call_operand.hbm [shape: f32[8,256], index: 0, kind: input, shape index: {}]   ;;  %s156_s1 = inlined_call_operand.hbm [shape: f32[8,128], index: 1, kind: input, shape index: {}]   ;;  %s157_s2 = inlined_call_operand.hbm [shape: f32[8,256], index: 2, kind: output, shape index: {}]  }
   0x1   :  { %8 = vsyncpa [#allocation6], 0 }
   0x2   :  { %9 = vsyncpa [#allocation4], 0  ;;  %s128_s9 = smov [#allocation2]   ;;  %s129_s11 = smov [#allocation5]  }
   0x3   :  { %s16_s10 = sshll.u32 %s128_s9, 4  ;;  %s26_s12 = sshll.u32 %s129_s11, 4  ;;  %s17_s10 = int_to_ptr.vmem [resolvable:$true] %s16_s10  ;;  %s27_s12 = int_to_ptr.vmem [resolvable:$true] %s26_s12 }
   0x4   :  { %s70_s13 = scalar_lea.vmem %s17_s10, 256  ;;  %p75_p1 = scmp.lt.s32.totalorder %s17_s10, %s17_s10 }
   0x5   :  { %p71_p0 = scmp.ne.s32.totalorder %s17_s10, %s70_s13  ;;  %p76_p2 = scmp.lt.s32.totalorder %s70_s13, %s70_s13 }
   0x7   :  { %p77_p3 = por %p76_p2, %p75_p1 }
   0x9   :  { %p78_p4 = pnand %p77_p3, %p71_p0 }
   0xb   :  { %81 = shalt.err (!%p78_p4)
}
   0xc   :  { %19 = dma.hbm_to_vmem [thread:$0]  %s155_s0, 256, %s17_s10, [#allocation3]  }
   0xd   :  { %s90_s16 = scalar_lea.vmem %s27_s12, 128  ;;  %p95_p6 = scmp.lt.s32.totalorder %s27_s12, %s27_s12 }
   0xe   :  { %p91_p5 = scmp.ne.s32.totalorder %s27_s12, %s90_s16  ;;  %p96_p7 = scmp.lt.s32.totalorder %s90_s16, %s90_s16 }
  0x10   :  { %p97_p8 = por %p96_p7, %p95_p6 }
  0x12   :  { %p98_p9 = pnand %p97_p8, %p91_p5 }
  0x14   :  { %101 = shalt.err (!%p98_p9)
}
  0x15   :  { %29 = dma.hbm_to_vmem [thread:$0]  %s156_s1, 128, %s27_s12, [#allocation6]  }
  0x16   :  { %122 = dma.done.wait [#allocation3], 256  }
  0x17   :  { %123 = vsyncadd [#allocation3], 4294967040 }
  0x18   :  { %124 = dma.done.wait [#allocation6], 128  }
  0x19   :  { %125 = vsyncadd [#allocation6], 4294967168  ;;  %s130_s19 = smov [#allocation7]   ;;  %v36_v0 = vld [vmem:[#allocation5] sm:$0xff]  ;;  %v37_v1 = vld [vmem:[#allocation2] sm:$0xff] }
  0x1a   :  { %s49_s20 = sshll.u32 %s130_s19, 4  ;;  %v40_v2 = vld [vmem:[#allocation2 + $0x8] sm:$0xff]  ;;  %v38_v3 = vadd.f32 %v37_v1, %v36_v0  ;;  %s50_s20 = int_to_ptr.vmem [resolvable:$true] %s49_s20 }
  0x1b   :  { %v41_v4 = vadd.f32 %v40_v2, %v36_v0  ;;  %s102_s0 = scalar_lea.vmem %s50_s20, 256  ;;  %p107_p11 = scmp.lt.s32.totalorder %s50_s20, %s50_s20 }
  0x1c   :  { %39 = vst [vmem:[#allocation7] sm:$0xff] %v38_v3  ;;  %p103_p10 = scmp.ne.s32.totalorder %s50_s20, %s102_s0  ;;  %p108_p12 = scmp.lt.s32.totalorder %s102_s0, %s102_s0 }
  0x1d   :  { %42 = vst [vmem:[#allocation7 + $0x8] sm:$0xff] %v41_v4 }
  0x1e   :  { %p109_p13 = por %p108_p12, %p107_p11 }
  0x20   :  { %p110_p0 = pnand %p109_p13, %p103_p10 }
  0x22   :  { %113 = shalt.err (!%p110_p0)
}
  0x23   :  { %52 = dma.vmem_to_hbm [thread:$0]  %s50_s20, 256, %s157_s2, [#allocation4]  }
  0x24   :  { %126 = dma.done.wait [#allocation4], 256  }
  0x25   :  { %127 = vsyncadd [#allocation4], 4294967040 }
  0x26   :  { %56 = vsyncpa [#allocation3], 1 }
  0x27   :  { %57 = vsyncpa [#allocation6], 1 }
  0x28   :  { %58 = vsyncpa [#allocation4], 1 }

</bundles_post_ra>
